<compile_context>
chip_gen: v6e
topology: v6e:2x2x1
jax: 0.10.0
libtpu: 0.0.40
codegen_flags: <defaults>
</compile_context>

<pallas_src>
import jax
import jax.numpy as jnp
from jax.experimental import pallas as pl
from jax.experimental.pallas import tpu as pltpu


def _round_up(v, m):
    return (v + m - 1) // m * m


def _pick_tile(total, target):
    """Largest divisor of `total` that is a multiple of 128 and <= target."""
    target = max(128, min(target, total))
    best, t = 128, 128
    while t <= target:
        if total % t == 0:
            best = t
        t += 128
    return best


def _vmem_budget_bytes():
    """~3/4 of physical VMEM (v7x: ~48 MiB, v5e/v6e: ~96 MiB)."""
    try:
        cap = int(pltpu.get_tpu_info().vmem_capacity_bytes)
    except Exception:
        cap = 64 << 20  # conservative fallback (v7x per-core size)
    return max(16 << 20, (cap * 3) // 4)


# ------------------- Kernel A: feature transform  xw = x @ W -----------------
def _xw_kernel(x_ref, w_ref, xw_ref):
    xw_ref[...] = jnp.dot(
        x_ref[...], w_ref[...], preferred_element_type=jnp.float32
    ).astype(xw_ref.dtype)


# ------------------- Kernel B: aggregation  out = adj @ xw -------------------
def _xw_block(adj_ref, xw_ref):
    """Return the (tile_k, out_pad) slab of xw matching the current adj tile."""
    tile_k = adj_ref.shape[1]
    if xw_ref.shape[0] == tile_k:  # streamed K-slab (index_map already did it)
        return xw_ref[...]
    # fully VMEM-resident xw: slice the K-slab out of the resident block
    k = pl.program_id(1)
    start = pl.multiple_of(k * tile_k, 128)
    return xw_ref[pl.ds(start, tile_k), :]


def _aggregate_direct_kernel(adj_ref, xw_ref, o_ref):
    # out dtype is f32: accumulate straight into the resident output block
    # (its block index is constant across k), no scratch, no final cast.
    k = pl.program_id(1)

    @pl.when(k == 0)
    def _():
        o_ref[...] = jnp.zeros_like(o_ref)

    o_ref[...] += jnp.dot(
        adj_ref[...], _xw_block(adj_ref, xw_ref),
        preferred_element_type=jnp.float32)


def _aggregate_acc_kernel(adj_ref, xw_ref, o_ref, acc_ref):
    # non-f32 output dtype: keep an f32 VMEM accumulator, cast on the last k.
    k = pl.program_id(1)

    @pl.when(k == 0)
    def _():
        acc_ref[...] = jnp.zeros_like(acc_ref)

    acc_ref[...] += jnp.dot(
        adj_ref[...], _xw_block(adj_ref, xw_ref),
        preferred_element_type=jnp.float32)

    @pl.when(k == pl.num_programs(1) - 1)
    def _():
        o_ref[...] = acc_ref[...].astype(o_ref.dtype)


def _pad_cast(a, shape, dtype):
    """Pad/cast only when needed; zero-copy fast path otherwise."""
    if a.shape == tuple(shape) and a.dtype == jnp.dtype(dtype):
        return a
    return jnp.zeros(shape, dtype).at[:a.shape[0], :a.shape[1]].set(a.astype(dtype))


def graph_conv(x, weight, adj, *, adj_dtype=jnp.bfloat16,
               tile_m=None, tile_k=None, stream_xw=None):
    """out = adj @ (x @ weight) with tiled, pipelined Pallas TPU kernels.

    adj_dtype: storage/MXU dtype of the O(N^2) adjacency stream
               (bf16 halves HBM bytes; f32 for bit-tight verification).
    tile_m:    row-tile size (default: <=512, capped at n_pad//2 for megacore).
    tile_k:    reduction-tile size over neighbors (default target 2048).
    stream_xw: force streaming xw per K-tile instead of VMEM residency (testing).
    """
    n, inp = x.shape
    out_dim = weight.shape[1]
    feat_dtype = x.dtype          # x / W / xw stay in the feature dtype (f32)
    out_dtype = x.dtype

    # ---- pad lane dims to multiples of 128 only (not of the tile) ----
    n_pad = _round_up(n, 128)
    inp_pad = _round_up(inp, 128)
    out_pad = _round_up(out_dim, 128)

    budget = _vmem_budget_bytes()

    # ---- decoupled tile_m / tile_k; keep >= 2 row tiles for v7x megacore ----
    tm_target = tile_m if tile_m is not None else min(512, max(128, n_pad // 2))
    tk_target = tile_k if tile_k is not None else 2048
    tm = _pick_tile(n_pad, tm_target)
    tk = _pick_tile(n_pad, tk_target)

    adj_b = jnp.dtype(adj_dtype).itemsize
    feat_b = jnp.dtype(feat_dtype).itemsize
    out_b = jnp.dtype(out_dtype).itemsize
    use_scratch = (jnp.dtype(out_dtype) != jnp.dtype(jnp.float32))

    # xw is VMEM-resident in the aggregation kernel whenever it comfortably fits.
    if stream_xw is None:
        xw_resident = 2 * n_pad * out_pad * 4 <= min(budget // 4, 16 << 20)
    else:
        xw_resident = not stream_xw

    def _need(tm_, tk_, res_):
        # Kernel A: x tiles + resident weight block + xw output tiles (f32)
        a_need = (2 * tm_ * inp_pad * feat_b
                  + 2 * inp_pad * out_pad * feat_b
                  + 2 * tm_ * out_pad * 4)
        # Kernel B: adj tiles + xw (resident or streamed) + out tiles + scratch
        xw_bytes = (2 * n_pad * out_pad * 4) if res_ else (2 * tk_ * out_pad * 4)
        b_need = (2 * tm_ * tk_ * adj_b
                  + xw_bytes
                  + 2 * tm_ * out_pad * out_b
                  + (tm_ * out_pad * 4 if use_scratch else 0)
                  + (tm_ * tk_ * 4 if adj_b < 4 else 0))  # f32 staging of adj in dot
        return max(a_need, b_need)

    # shrink until it fits the chip's VMEM budget
    while _need(tm, tk, xw_resident) > budget:
        if xw_resident and 2 * n_pad * out_pad * 4 > budget // 2:
            xw_resident = False
        elif tk > 128:
            tk = _pick_tile(n_pad, tk - 128)
        elif tm > 128:
            tm = _pick_tile(n_pad, tm - 128)
        else:
            break
    need = _need(tm, tk, xw_resident)
    vmem_limit = int(max(need, min(budget, max(2 * need, 32 << 20))))

    # ---- padding / casting (zero-copy when already conforming) ----
    x_p = _pad_cast(x, (n_pad, inp_pad), feat_dtype)
    w_p = _pad_cast(weight, (inp_pad, out_pad), feat_dtype)
    adj_p = _pad_cast(adj, (n_pad, n_pad), adj_dtype)

    # ---------------- phase 1: xw = x @ W  (tiny, computed once, f32) -----------
    xw = pl.pallas_call(
        _xw_kernel,
        out_shape=jax.ShapeDtypeStruct((n_pad, out_pad), jnp.float32),
        grid_spec=pltpu.PrefetchScalarGridSpec(
            num_scalar_prefetch=0,
            grid=(n_pad // tm,),
            in_specs=[
                pl.BlockSpec((tm, inp_pad), lambda i: (i, 0)),
                pl.BlockSpec((inp_pad, out_pad), lambda i: (0, 0)),  # weight resident
            ],
            out_specs=pl.BlockSpec((tm, out_pad), lambda i: (i, 0)),
        ),
        compiler_params=pltpu.CompilerParams(
            dimension_semantics=("parallel",),
            vmem_limit_bytes=vmem_limit,
        ),
    )(x_p, w_p)

    # ---------------- phase 2: out = adj @ xw  (tiled reduction over K) ---------
    if xw_resident:
        # DMA'd once for the whole kernel (constant block index), sliced in-kernel.
        xw_spec = pl.BlockSpec((n_pad, out_pad), lambda i, k: (0, 0))
    else:
        xw_spec = pl.BlockSpec((tk, out_pad), lambda i, k: (k, 0))

    if use_scratch:
        agg_kernel = _aggregate_acc_kernel
        scratch = [pltpu.VMEM((tm, out_pad), jnp.float32)]
    else:
        agg_kernel = _aggregate_direct_kernel
        scratch = []

    out_p = pl.pallas_call(
        agg_kernel,
        out_shape=jax.ShapeDtypeStruct((n_pad, out_pad), out_dtype),
        grid_spec=pltpu.PrefetchScalarGridSpec(
            num_scalar_prefetch=0,
            grid=(n_pad // tm, n_pad // tk),
            in_specs=[
                pl.BlockSpec((tm, tk), lambda i, k: (i, k)),  # adj tile (HBM stream)
                xw_spec,
            ],
            out_specs=pl.BlockSpec((tm, out_pad), lambda i, k: (i, 0)),
            scratch_shapes=scratch,
        ),
        compiler_params=pltpu.CompilerParams(
            dimension_semantics=("parallel", "arbitrary"),
            vmem_limit_bytes=vmem_limit,
        ),
    )(adj_p, xw)

    return out_p[:n, :out_dim]


if __name__ == "__main__":
    key = jax.random.PRNGKey(0)
    k_x, k_w, k_a = jax.random.split(key, 3)

    N, INP, OUT = 256, 64, 32

    # Node features and deterministic weight init (nn.Parameter(FloatTensor(inp, out))).
    x = jax.random.normal(k_x, (N, INP), dtype=jnp.float32)
    weight = jax.random.normal(k_w, (INP, OUT), dtype=jnp.float32) * 0.1

    # Symmetric adjacency + self-loops, normalized: D^-0.5 . A . D^-0.5 (plain-JAX glue).
    a_raw = (jax.random.uniform(k_a, (N, N)) < 0.1).astype(jnp.float32)
    a_sym = jnp.maximum(a_raw, a_raw.T) + jnp.eye(N, dtype=jnp.float32)
    deg = jnp.sum(a_sym, axis=1)
    d_inv_sqrt = 1.0 / jnp.sqrt(deg)
    adj = a_sym * d_inv_sqrt[:, None] * d_inv_sqrt[None, :]

    ref = adj @ (x @ weight)

    # 1) f32 adj path (zero-copy adj, direct f32 accumulation): must be tight.
    out_f32 = jax.block_until_ready(graph_conv(x, weight, adj, adj_dtype=jnp.float32))
    assert out_f32.shape == (N, OUT)
    assert jnp.allclose(out_f32, ref, atol=1e-4, rtol=1e-4)

    # 2) bf16 adj / f32 everything-else: the throughput config (default tiles,
    #    VMEM-resident xw).
    out_bf16 = jax.block_until_ready(graph_conv(x, weight, adj, adj_dtype=jnp.bfloat16))
    assert out_bf16.shape == (N, OUT)
    assert jnp.allclose(out_bf16, ref, atol=2e-2, rtol=2e-2)

    # 3) multi-K-tile grid (exercises resident-xw slicing + k-accumulation).
    out_mk = jax.block_until_ready(
        graph_conv(x, weight, adj, adj_dtype=jnp.bfloat16, tile_m=128, tile_k=128))
    assert jnp.allclose(out_mk, ref, atol=2e-2, rtol=2e-2)

    # 4) streamed-xw fallback path (used when xw is too big for residency).
    out_st = jax.block_until_ready(
        graph_conv(x, weight, adj, adj_dtype=jnp.bfloat16, tile_m=128, tile_k=128,
                   stream_xw=True))
    assert jnp.allclose(out_st, ref, atol=2e-2, rtol=2e-2)

    print("KERNEL_OK")
</pallas_src>

<mosaic_0001>
module attributes {stable_mosaic.version = 11 : i64} {
  func.func @_xw_kernel(%arg0: i32, %arg1: memref<128x128xf32, #tpu.memory_space<vmem>>, %arg2: memref<128x128xf32, #tpu.memory_space<vmem>>, %arg3: memref<128x128xf32, #tpu.memory_space<vmem>>) attributes {dimension_semantics = [#tpu.dimension_semantics<parallel>], iteration_bounds = array<i64: 2>, scalar_prefetch = 0 : i64, scratch_operands = 0 : i64, tpu.core_type = #tpu.core_type<tc>, window_params = [{transform_indices = @transform_0, window_bounds = array<i64: 128, 128>}, {pipeline_mode = #tpu.pipeline_mode<synchronous>, transform_indices = @transform_1, window_bounds = array<i64: 128, 128>}, {transform_indices = @transform_2, window_bounds = array<i64: 128, 128>}]} {
    %c0 = arith.constant 0 : index
    %c0_0 = arith.constant 0 : index
    %0 = vector.load %arg1[%c0, %c0_0] : memref<128x128xf32, #tpu.memory_space<vmem>>, vector<128x128xf32>
    %c0_1 = arith.constant 0 : index
    %c0_2 = arith.constant 0 : index
    %1 = vector.load %arg2[%c0_1, %c0_2] : memref<128x128xf32, #tpu.memory_space<vmem>>, vector<128x128xf32>
    %cst = arith.constant dense<0.000000e+00> : vector<128x128xf32>
    %2 = tpu.matmul %0, %1, %cst {dimension_numbers = #tpu.dot_dimension_numbers<[1], [0], [0], [1], [0, 0, 1, 1], [], []>} : vector<128x128xf32>, vector<128x128xf32>, vector<128x128xf32> -> vector<128x128xf32>
    %c0_3 = arith.constant 0 : index
    %c0_4 = arith.constant 0 : index
    %3 = vector.load %arg3[%c0_3, %c0_4] : memref<128x128xf32, #tpu.memory_space<vmem>>, vector<128x128xf32>
    tpu.vector_store %arg3[%c0_3, %c0_4], %2 {strides = array<i32>} : memref<128x128xf32, #tpu.memory_space<vmem>>, vector<128x128xf32>,
    return
  }
  func.func @transform_0(%arg0: i32) -> (i32, i32) {
    %c0_i32 = arith.constant 0 : i32
    %c0_i32_0 = arith.constant 0 : i32
    return %arg0, %c0_i32 : i32, i32
  }
  func.func @transform_1(%arg0: i32) -> (i32, i32) {
    %c0_i32 = arith.constant 0 : i32
    %c0_i32_0 = arith.constant 0 : i32
    %c0_i32_1 = arith.constant 0 : i32
    return %c0_i32, %c0_i32_0 : i32, i32
  }
  func.func @transform_2(%arg0: i32) -> (i32, i32) {
    %c0_i32 = arith.constant 0 : i32
    %c0_i32_0 = arith.constant 0 : i32
    return %arg0, %c0_i32 : i32, i32
  }
}

</mosaic_0001>

<bundles_post_ra>
// kernel: tpu_custom_call.1
= control target key start
LH: loop header
LB: loop body
LE: loop exit
PB: predicated region body
PF: predicated region fallthrough
CT: control target
= control target key end

     0   :  { %7 = vsyncpa [#allocation3], 0  ;;  %s1038_s0 = inlined_call_operand.hbm [shape: f32[256,128], index: 0, kind: input, shape index: {}]   ;;  %s1039_s1 = inlined_call_operand.hbm [shape: f32[128,128], index: 1, kind: input, shape index: {}]   ;;  %s1040_s2 = inlined_call_operand.hbm [shape: f32[256,128], index: 2, kind: output, shape index: {}]  }
   0x1   :  { %9 = vsyncpa [#allocation3 + $0x1], 0 }
   0x2   :  { %10 = vsyncpa [#allocation6], 0 }
   0x3   :  { %11 = vsyncpa [#allocation4], 0 }
   0x4   :  { %13 = vsyncpa [#allocation4 + $0x1], 0  ;;  %s814_s9 = smov 0   ;;  %s816_s10 = smov 0  }
   0x5   :  { %s818_s11 = smov 0   ;;  %s820_s12 = smov 0  }
   0x6 LB: > { %s835_s13 = sadd.s32 4294967295, %s790_s12   ;;  %s469_s14 = sadd.s32 4294967294, %s790_s12   ;;  %s790_s12 = sphi %s820_s12, %s1062_s12   ;;  %s786_s11 = sphi %s818_s11, %s1061_s11   ;;  %s782_s10 = sphi %s816_s10, %s1060_s10   ;;  %s778_s9 = sphi %s814_s9, %s1059_s9  }
   0x7   : > { %p39_p0 = scmp.ne.s32.totalorder %s782_s10, %s778_s9  ;;  %p1041_p1 = scmp.eq.s32.totalorder %s835_s13, 0 }
   0x8   : > { %p90_p3 = scmp.eq.s32.totalorder %s469_s14, 1  ;;  %p470_p5 = scmp.ge.s32.totalorder %s790_s12, 1 }
   0x9   : > { %p844_p4 = por %p1041_p1, %p39_p0  ;;  %p97_p7 = scmp.lt.s32.totalorder %s790_s12, 3 }
   0xa   : > { %p849_p6 = por %p90_p3, %p39_p0  ;;  %s792_s18 = smov [#allocation5]  }
   0xb   : > { %s1045_s15 = scalar_select %p844_p4, 1, 0 }
   0xc   : > { %s1046_s16 = scalar_select %p849_p6, 1, 0 }
   0xd   : > { %p854_p8 = pnand %p470_p5, %p97_p7  ;;  %s109_s19 = sshll.u32 %s792_s18, 4  ;;  %s110_s19 = int_to_ptr.vmem [resolvable:$true] %s109_s19 }
   0xe   : > { %s868_s21 = sadd.s32 1, %s790_s12   ;;  %s26_s22 = sadd.s32 1, %s786_s11 }
   0xf   : > { %s1047_s17 = scalar_select %p854_p8, 1, 0 }
  0x10   : > { %p615_p9 = pneg %p854_p8  ;;  %s23_s23 = ssub.s32 %s790_s12, %s868_s21 }
  0x11   : > { %s679_s24 = scalar_lea.vmem %s110_s19, 2048  ;;  %p687_p5 = scmp.lt.s32.totalorder %s110_s19, %s110_s19 }
  0x12   : > { %p863_p11 = pnand %p615_p9, %p1041_p1  ;;  %p680_p13 = scmp.ne.s32.totalorder %s110_s19, %s679_s24 }
  0x13   : > { %p688_p7 = scmp.lt.s32.totalorder %s679_s24, %s679_s24 }
  0x14   : > { %p670_p12 = pneg %p863_p11 }
  0x15   : > { %p689_p10 = por %p688_p7, %p687_p5 }
  0x16   : > { %p682_p0 = pnand %p680_p13, %p670_p12 }
  0x18   : > { %p683_p3 = pneg %p682_p0 }
  0x1a   : > { %p690_p2 = pnand %p689_p10, %p683_p3 }
  0x1c   : > { %693 = shalt.err (!%p690_p2)
}
  0x1d   : > { %s793_s25 = smov 128   ;;  %s794_s26 = smov 8  }
  0x1e   : > { %618 = dma.hbm_to_vmem [thread:$0]  (!%p863_p11), %s1039_s1, 2048, %s110_s19, [#allocation6], %s793_s25, %s793_s25, %s794_s26  }
  0x1f   : > { %p24_p2 = scmp.eq.s32.totalorder %s23_s23, 0  ;;  %p33_p9 = scmp.ne.s32.totalorder %s786_s11, %s782_s10 }
  0x20   : > { %p34_p10 = scmp.eq.s32.totalorder %s790_s12, 0  ;;  %p628_p12 = scmp.lt.s32.totalorder %s790_s12, 2 }
  0x21   : > { %s888_s29 = scalar_select %p24_p2, %s786_s11, %s26_s22  }
  0x22   : > { %p35_p13 = por %p34_p10, %p33_p9  ;;  %p1049_p0 = scmp.eq.s32.totalorder %s835_s13, 1 }
  0x23   : > { %s123_s3 = sand.u32 1, %s786_s11   ;;  %s485_s4 = sshll.u32 %s790_s12, 11 }
  0x24   : > { %p892_p3 = por %p1049_p0, %p33_p9  ;;  %s473_s5 = sshll.u32 %s123_s3, 7 }
  0x25   : > { %s901_s8 = scalar_lea.hbm %s1038_s0, %s485_s4  ;;  %s127_s14 = scalar_lea.vmem [#allocation2], %s473_s5 }
  0x26   : > { %s1050_s30 = scalar_select %p892_p3, 1, 0 }
  0x27   : > { %s134_s18 = sshll.u32 %s127_s14, 4  ;;  %p903_p11 = pnand %p628_p12, %p35_p13  ;;  %s907_s18 = int_to_ptr.vmem [resolvable:$true] %s134_s18 }
  0x28   : > { %s909_s20 = scalar_lea.sflag [#allocation3], %s123_s3  ;;  %s694_s22 = scalar_lea.hbm %s901_s8, 2048 }
  0x29   : > { %p695_p5 = scmp.ne.s32.totalorder %s901_s8, %s694_s22  ;;  %p696_p7 = pneg %p903_p11 }
  0x2a   : > { %s699_s27 = scalar_lea.hbm %s1038_s0, 4096  ;;  %p700_p10 = scmp.lt.s32.totalorder %s901_s8, %s1038_s0 }
  0x2b   : > { %p697_p2 = pnand %p696_p7, %p695_p5  ;;  %p701_p12 = scmp.lt.s32.totalorder %s699_s27, %s694_s22 }
  0x2d   : > { %p698_p9 = pneg %p697_p2  ;;  %p702_p13 = por %p701_p12, %p700_p10 }
  0x2f   : > { %p703_p0 = pnand %p702_p13, %p698_p9 }
  0x31   : > { %706 = shalt.err (!%p703_p0)
}
  0x32   : > { %s707_s3 = scalar_lea.vmem %s907_s18, 2048  ;;  %s795_s5 = smov [#allocation2]  }
  0x33   : > { %p708_p1 = scmp.ne.s32.totalorder %s907_s18, %s707_s3  ;;  %s712_s6 = sshll.u32 %s795_s5, 4  ;;  %s713_s6 = int_to_ptr.vmem [resolvable:$false] %s712_s6 }
  0x34   : > { %s714_s7 = scalar_lea.vmem %s713_s6, 4096  ;;  %p715_p2 = scmp.lt.s32.totalorder %s907_s18, %s713_s6 }
  0x35   : > { %p710_p6 = pnand %p708_p1, %p696_p7  ;;  %p716_p3 = scmp.lt.s32.totalorder %s714_s7, %s707_s3 }
  0x37   : > { %p711_p5 = pneg %p710_p6  ;;  %p717_p4 = por %p716_p3, %p715_p2 }
  0x39   : > { %p718_p8 = pnand %p717_p4, %p711_p5 }
  0x3b   : > { %721 = shalt.err (!%p718_p8)
}
  0x3c   : > { %622 = dma.hbm_to_vmem [thread:$0]  (!%p903_p11), %s901_s8, 2048, %s907_s18, %s909_s20, %s793_s25, %s793_s25, %s794_s26  }
  0x3d   : > { %p1052_p1 = scmp.ne.s32.totalorder %s1047_s17, 0 }
  0x3e   : > { %s936_s14 = sand.u32 (!%p1052_p1), 1, %s782_s10   ;;  %p1053_p4 = scmp.ne.s32.totalorder (!%p1052_p1), %s1045_s15, 0 }
  0x3f   : > { %146 = sbr.rel (%p1052_p1) target bundleno = 327 (0x147), region = 28  ;;  %s477_s22 = sshll.u32 (!%p1052_p1), %s936_s14, 7 }
  0x40   : > { %s149_s23 = scalar_lea.sflag (!%p1052_p1), [#allocation3], %s936_s14  ;;  %s942_s19 = scalar_lea.vmem (!%p1052_p1), [#allocation2], %s477_s22 }
  0x44   : > { %765 = dma.done.wait (%p1053_p4), %s149_s23, 2048  }
  0x45   : > { %767 = vsyncadd (%p1053_p4), %s149_s23, 4294965248  ;;  %p1054_p6 = scmp.eq.s32.totalorder %s835_s13, 0 }
  0x47   : > { %769 = dma.done.wait (%p1054_p6), [#allocation6], 2048   ;;  %p1055_p8 = pmov %p1054_p6 }
  0x48   : > { %v210_v0 = vld [vmem:[#allocation5 + $0x78] sm:$0xff]  ;;  %v209_v1 = vld [vmem:[#allocation5 + $0x70] sm:$0xff]  ;;  %v208_v2 = vld [vmem:[#allocation5 + $0x68] sm:$0xff]  ;;  %s970_s15 = scalar_lea.vmem [#allocation7], %s477_s22  ;;  %s486_s17 = sshll.u32 %s835_s13, 11 }
  0x49   : > { %771 = vsyncadd (%p1055_p8), [#allocation6], 4294965248  ;;  %519 = vmatprep.subr.mxu0 %v210_v0  ;;  %575 = vmatprep.subr.mxu1 %v210_v0  ;;  %v207_v3 = vld [vmem:[#allocation5 + $0x60] sm:$0xff]  ;;  %v206_v4 = vld [vmem:[#allocation5 + $0x58] sm:$0xff]  ;;  %s386_s25 = sshll.u32 %s970_s15, 4  ;;  %s989_s18 = scalar_lea.hbm %s1040_s2, %s486_s17  ;;  %s991_s25 = int_to_ptr.vmem [resolvable:$true] %s386_s25 }
  0x4a   : > { %520 = vmatpush3.msra.mxu0 %v210_v0  ;;  %591 = vmatpush3.msra.mxu1 %v210_v0  ;;  %v205_v5 = vld [vmem:[#allocation5 + $0x50] sm:$0xff]  ;;  %v204_v6 = vld [vmem:[#allocation5 + $0x48] sm:$0xff]  ;;  %v203_v7 = vld [vmem:[#allocation5 + $0x40] sm:$0xff]  ;;  %s373_s13 = scalar_lea.sflag [#allocation4], %s936_s14  ;;  %s722_s20 = scalar_lea.vmem %s991_s25, 2048 }
  0x4b   : > { %521 = vmatprep.subr.mxu0 %v209_v1  ;;  %576 = vmatprep.subr.mxu1 %v209_v1  ;;  %v202_v8 = vld [vmem:[#allocation5 + $0x38] sm:$0xff]  ;;  %v201_v9 = vld [vmem:[#allocation5 + $0x30] sm:$0xff]  ;;  %v200_v10 = vld [vmem:[#allocation5 + $0x28] sm:$0xff]  ;;  %p723_p3 = scmp.ne.s32.totalorder %s991_s25, %s722_s20  ;;  %p1056_p11 = scmp.ne.s32.totalorder %s1050_s30, 0 }
  0x4c   : > { %522 = vmatpush3.msra.mxu0 %v209_v1  ;;  %592 = vmatpush3.msra.mxu1 %v209_v1  ;;  %v199_v11 = vld [vmem:[#allocation5 + $0x20] sm:$0xff]  ;;  %v198_v12 = vld [vmem:[#allocation5 + $0x18] sm:$0xff]  ;;  %v197_v13 = vld [vmem:[#allocation5 + $0x10] sm:$0xff]  ;;  %s796_s24 = smov [#allocation7]  }
  0x4d   : > { %523 = vmatprep.subr.mxu0 %v208_v2  ;;  %577 = vmatprep.subr.mxu1 %v208_v2  ;;  %v196_v14 = vld [vmem:[#allocation5 + $0x8] sm:$0xff]  ;;  %v195_v15 = vld [vmem:[#allocation5] sm:$0xff]  ;;  %v181_v20 = vld [vmem:[%s942_s19 + $0x10] sm:$0xff]  ;;  %p724_p7 = pnand %p723_p3, %p1056_p11  ;;  %s726_s27 = sshll.u32 %s796_s24, 4  ;;  %s727_s27 = int_to_ptr.vmem [resolvable:$false] %s726_s27 }
  0x4e   : > { %524 = vmatpush3.msra.mxu0 %v208_v2  ;;  %593 = vmatpush3.msra.mxu1 %v208_v2  ;;  %v179_v16 = vld [vmem:[%s942_s19] sm:$0xff]  ;;  %v180_v18 = vld [vmem:[%s942_s19 + $0x8] sm:$0xff]  ;;  %v189_v21 = vld [vmem:[%s942_s19 + $0x50] sm:$0xff]  ;;  %s728_s28 = scalar_lea.vmem %s727_s27, 4096  ;;  %p729_p10 = scmp.lt.s32.totalorder %s991_s25, %s727_s27 }
  0x4f   : > { %525 = vmatprep.subr.mxu0 %v207_v3  ;;  %578 = vmatprep.subr.mxu1 %v207_v3  ;;  %v187_v17 = vld [vmem:[%s942_s19 + $0x40] sm:$0xff]  ;;  %v188_v19 = vld [vmem:[%s942_s19 + $0x48] sm:$0xff]  ;;  %v182_v22 = vld [vmem:[%s942_s19 + $0x18] sm:$0xff]  ;;  %p725_p9 = pneg %p724_p7  ;;  %p730_p12 = scmp.lt.s32.totalorder %s728_s28, %s722_s20 }
  0x50   : > { %526 = vmatpush3.msra.mxu0 %v207_v3  ;;  %594 = vmatpush3.msra.mxu1 %v207_v3  ;;  %v190_v23 = vld [vmem:[%s942_s19 + $0x58] sm:$0xff]  ;;  %v183_v24 = vld [vmem:[%s942_s19 + $0x20] sm:$0xff]  ;;  %v184_v26 = vld [vmem:[%s942_s19 + $0x28] sm:$0xff] }
  0x51   : > { %527 = vmatprep.subr.mxu0 %v206_v4  ;;  %579 = vmatprep.subr.mxu1 %v206_v4  ;;  %v191_v25 = vld [vmem:[%s942_s19 + $0x60] sm:$0xff]  ;;  %v192_v27 = vld [vmem:[%s942_s19 + $0x68] sm:$0xff]  ;;  %v185_v28 = vld [vmem:[%s942_s19 + $0x30] sm:$0xff]  ;;  %p731_p13 = por %p730_p12, %p729_p10 }
  0x52   : > { %528 = vmatpush3.msra.mxu0 %v206_v4  ;;  %595 = vmatpush3.msra.mxu1 %v206_v4  ;;  %v193_v29 = vld [vmem:[%s942_s19 + $0x70] sm:$0xff]  ;;  %v186_v30 = vld [vmem:[%s942_s19 + $0x38] sm:$0xff] }
  0x53   : > { %529 = vmatprep.subr.mxu0 %v205_v5  ;;  %580 = vmatprep.subr.mxu1 %v205_v5  ;;  %v194_v31 = vld [vmem:[%s942_s19 + $0x78] sm:$0xff]  ;;  %p732_p0 = pnand %p731_p13, %p725_p9 }
  0x54   : > { %530 = vmatpush3.msra.mxu0 %v205_v5  ;;  %596 = vmatpush3.msra.mxu1 %v205_v5 }
  0x55   : > { %531 = vmatprep.subr.mxu0 %v204_v6  ;;  %581 = vmatprep.subr.mxu1 %v204_v6 }
  0x56   : > { %532 = vmatpush3.msra.mxu0 %v204_v6  ;;  %597 = vmatpush3.msra.mxu1 %v204_v6 }
  0x57   : > { %533 = vmatprep.subr.mxu0 %v203_v7  ;;  %582 = vmatprep.subr.mxu1 %v203_v7 }
  0x58   : > { %534 = vmatpush3.msra.mxu0 %v203_v7  ;;  %598 = vmatpush3.msra.mxu1 %v203_v7 }
  0x59   : > { %535 = vmatprep.subr.mxu0 %v202_v8  ;;  %583 = vmatprep.subr.mxu1 %v202_v8 }
  0x5a   : > { %536 = vmatpush3.msra.mxu0 %v202_v8  ;;  %599 = vmatpush3.msra.mxu1 %v202_v8 }
  0x5b   : > { %537 = vmatprep.subr.mxu0 %v201_v9  ;;  %584 = vmatprep.subr.mxu1 %v201_v9 }
  0x5c   : > { %538 = vmatpush3.msra.mxu0 %v201_v9  ;;  %600 = vmatpush3.msra.mxu1 %v201_v9 }
  0x5d   : > { %539 = vmatprep.subr.mxu0 %v200_v10  ;;  %585 = vmatprep.subr.mxu1 %v200_v10 }
  0x5e   : > { %540 = vmatpush3.msra.mxu0 %v200_v10  ;;  %601 = vmatpush3.msra.mxu1 %v200_v10 }
  0x5f   : > { %541 = vmatprep.subr.mxu0 %v199_v11  ;;  %586 = vmatprep.subr.mxu1 %v199_v11 }
  0x60   : > { %542 = vmatpush3.msra.mxu0 %v199_v11  ;;  %602 = vmatpush3.msra.mxu1 %v199_v11 }
  0x61   : > { %543 = vmatprep.subr.mxu0 %v198_v12  ;;  %587 = vmatprep.subr.mxu1 %v198_v12 }
  0x62   : > { %544 = vmatpush3.msra.mxu0 %v198_v12  ;;  %603 = vmatpush3.msra.mxu1 %v198_v12 }
  0x63   : > { %545 = vmatprep.subr.mxu0 %v197_v13  ;;  %588 = vmatprep.subr.mxu1 %v197_v13 }
  0x64   : > { %546 = vmatpush3.msra.mxu0 %v197_v13  ;;  %604 = vmatpush3.msra.mxu1 %v197_v13 }
  0x65   : > { %547 = vmatprep.subr.mxu0 %v196_v14  ;;  %589 = vmatprep.subr.mxu1 %v196_v14 }
  0x66   : > { %548 = vmatpush3.msra.mxu0 %v196_v14  ;;  %605 = vmatpush3.msra.mxu1 %v196_v14 }
  0x67   : > { %549 = vmatprep.subr.mxu0 %v195_v15  ;;  %590 = vmatprep.subr.mxu1 %v195_v15 }
  0x68   : > { %550 = vmatpush3.msra.mxu0 %v195_v15  ;;  %606 = vmatpush3.msra.mxu1 %v195_v15 }
  0x69   : > { %551 = vmatprep.mubr.f32.mxu0 %v179_v16  ;;  %563 = vmatprep.mubr.f32.mxu1 %v187_v17 }
  0x6a   : > { %552 = vmatmul.mubr.f32.vlgmr.msra.gmra.mxu0 %v180_v18  ;;  %564 = vmatmul.mubr.f32.vlgmr.msra.gmra.mxu1 %v188_v19 }
  0x6b   : > { %554 = vmatprep.mubr.f32.mxu0 %v181_v20  ;;  %566 = vmatprep.mubr.f32.mxu1 %v189_v21 }
  0x6e   : > { %555 = vmatmul.mubr.f32.gmra.mxu0 %v182_v22  ;;  %567 = vmatmul.mubr.f32.gmra.mxu1 %v190_v23 }
  0x6f   : > { %557 = vmatprep.mubr.f32.mxu0 %v183_v24  ;;  %569 = vmatprep.mubr.f32.mxu1 %v191_v25 }
  0x72   : > { %558 = vmatmul.mubr.f32.gmra.mxu0 %v184_v26  ;;  %570 = vmatmul.mubr.f32.gmra.mxu1 %v192_v27 }
  0x73   : > { %560 = vmatprep.mubr.f32.mxu0 %v185_v28  ;;  %572 = vmatprep.mubr.f32.mxu1 %v193_v29 }
  0x76   : > { %561 = vmatmul.mubr.f32.gmra.mxu0 %v186_v30  ;;  %573 = vmatmul.mubr.f32.gmra.mxu1 %v194_v31 }
 0x12a   : > { %v553_v32 = vpop.f32.mrf.mxu0  ;;  %v565_v33 = vpop.f32.mrf.mxu1 }
 0x12b   : > { %357 = vst [vmem:[%s970_s15 + $0x8] sm:$0xff] %v553_v32  ;;  %365 = vst [vmem:[%s970_s15 + $0x48] sm:$0xff] %v565_v33 }
 0x12c   : > { %v277_v34 = vpop.f32.mrf.mxu0  ;;  %v317_v35 = vpop.f32.mrf.mxu1 }
 0x12d   : > { %356 = vst [vmem:[%s970_s15] sm:$0xff] %v277_v34  ;;  %364 = vst [vmem:[%s970_s15 + $0x40] sm:$0xff] %v317_v35 }
 0x12e   : > { %v556_v36 = vpop.f32.mrf.mxu0  ;;  %v568_v37 = vpop.f32.mrf.mxu1 }
 0x12f   : > { %359 = vst [vmem:[%s970_s15 + $0x18] sm:$0xff] %v556_v36  ;;  %367 = vst [vmem:[%s970_s15 + $0x58] sm:$0xff] %v568_v37 }
 0x130   : > { %v287_v38 = vpop.f32.mrf.mxu0  ;;  %v327_v39 = vpop.f32.mrf.mxu1 }
 0x131   : > { %358 = vst [vmem:[%s970_s15 + $0x10] sm:$0xff] %v287_v38  ;;  %366 = vst [vmem:[%s970_s15 + $0x50] sm:$0xff] %v327_v39 }
 0x132   : > { %v559_v40 = vpop.f32.mrf.mxu0  ;;  %v571_v41 = vpop.f32.mrf.mxu1 }
 0x133   : > { %361 = vst [vmem:[%s970_s15 + $0x28] sm:$0xff] %v559_v40  ;;  %369 = vst [vmem:[%s970_s15 + $0x68] sm:$0xff] %v571_v41 }
 0x134   : > { %v297_v42 = vpop.f32.mrf.mxu0  ;;  %v337_v43 = vpop.f32.mrf.mxu1 }
 0x135   : > { %360 = vst [vmem:[%s970_s15 + $0x20] sm:$0xff] %v297_v42  ;;  %368 = vst [vmem:[%s970_s15 + $0x60] sm:$0xff] %v337_v43 }
 0x136   : > { %v562_v44 = vpop.f32.mrf.mxu0  ;;  %v574_v45 = vpop.f32.mrf.mxu1 }
 0x137   : > { %363 = vst [vmem:[%s970_s15 + $0x38] sm:$0xff] %v562_v44  ;;  %371 = vst [vmem:[%s970_s15 + $0x78] sm:$0xff] %v574_v45 }
 0x138   : > { %v307_v46 = vpop.f32.mrf.mxu0  ;;  %v347_v47 = vpop.f32.mrf.mxu1 }
 0x139   : > { %362 = vst [vmem:[%s970_s15 + $0x30] sm:$0xff] %v307_v46  ;;  %370 = vst [vmem:[%s970_s15 + $0x70] sm:$0xff] %v347_v47 }
 0x13a   : > { %735 = shalt.err (!%p732_p0)
}
 0x13b   : > { %s736_s4 = scalar_lea.hbm %s989_s18, 2048  ;;  %s740_s6 = scalar_lea.hbm %s1040_s2, 4096 }
 0x13c   : > { %p737_p5 = scmp.ne.s32.totalorder %s989_s18, %s736_s4  ;;  %p741_p4 = scmp.lt.s32.totalorder %s989_s18, %s1040_s2 }
 0x13d   : > { %p742_p6 = scmp.lt.s32.totalorder %s740_s6, %s736_s4 }
 0x13e   : > { %p738_p2 = pnand %p737_p5, %p1056_p11 }
 0x13f   : > { %p743_p8 = por %p742_p6, %p741_p4 }
 0x140   : > { %p739_p1 = pneg %p738_p2 }
 0x142   : > { %p744_p3 = pnand %p743_p8, %p739_p1 }
 0x144   : > { %747 = shalt.err (!%p744_p3)
}
 0x145   : > { %s797_s23 = smov 128   ;;  %s798_s19 = smov 8  }
 0x146   : > { %613 = dma.vmem_to_hbm [thread:$0]  (%p1056_p11), %s991_s25, 2048, %s989_s18, %s373_s13, %s797_s23, %s797_s23, %s798_s19  }
 0x147 PF: > { %s401_s15 = sand.u32 1, %s778_s9   ;;  %p1057_p7 = scmp.ne.s32.totalorder %s1046_s16, 0 }
 0x148   : > { %p1058_p9 = scmp.ge.s32.totalorder %s790_s12, 2  ;;  %s402_s17 = scalar_lea.sflag [#allocation4], %s401_s15 }
 0x14a   : > { %p624_p10 = pnand %p1058_p9, %p1057_p7 }
 0x14c   : > { %p625_p12 = pneg %p624_p10 }
 0x14e   : > { %773 = dma.done.wait (%p625_p12), %s402_s17, 2048  }
 0x14f   : > { %775 = vsyncadd (%p625_p12), %s402_s17, 4294965248  ;;  %p16_p13 = scmp.ge.s32.totalorder %s868_s21, 4   ;;  %s1059_s9 = smov %s782_s10 }
 0x150   : > { %s1060_s10 = smov %s786_s11  ;;  %s1061_s11 = smov %s888_s29 }
 0x151   : > { %s1062_s12 = smov %s868_s21  ;;  %18 = sbr.rel (!%p16_p13) target bundleno = 6 (0x6), region = 77 }
 0x156   :  { %407 = vsyncpa [#allocation3], 1 }
 0x157   :  { %409 = vsyncpa [#allocation3 + $0x1], 1 }
 0x158   :  { %410 = vsyncpa [#allocation6], 1 }
 0x159   :  { %411 = vsyncpa [#allocation4], 1 }
 0x15a   :  { %413 = vsyncpa [#allocation4 + $0x1], 1 }

</bundles_post_ra>
